<compile_context>
chip_gen: v7x
topology: tpu7x:2x2x1
jax: 0.10.0
libtpu: 0.0.40
codegen_flags: <defaults>
</compile_context>

<pallas_src>
import math

import jax
import jax.numpy as jnp
from jax.experimental import pallas as pl
from jax.experimental.pallas import tpu as pltpu

_C1 = 0.01 ** 2
_C2 = 0.03 ** 2

_LANES = 128
_SUBLANES = 8
_GROUP = 16        # strip-mine row-group size (bf16 (16,128) vreg packing)
_MAX_TILE_R = 256  # 16 taps * 256 rows * 128 lanes * 2B = 1 MiB per input per buffer


def _ceil_div(a, b):
    return -(-a // b)


def _round_up(a, b):
    return _ceil_div(a, b) * b


def _gaussian_taps(ksize, sigma=1.5):
    """Flattened (ky, kx) 2-D Gaussian window as compile-time Python floats."""
    g = [math.exp(-((x - ksize // 2) ** 2) / (2.0 * sigma ** 2)) for x in range(ksize)]
    s = sum(g)
    g = [v / s for v in g]
    return tuple(float(g[ky] * g[kx]) for ky in range(ksize) for kx in range(ksize))


def _im2col_taps_first(img, ksize, stride, pad):
    """img: (N, C, H, W) -> (ksize*ksize, N*C*OH*OW): taps leading, lane-dense M."""
    n, c, h, w = img.shape
    oh = (h + 2 * pad - ksize) // stride + 1
    ow = (w + 2 * pad - ksize) // stride + 1
    assert stride == ksize, "fast im2col path requires stride == kernel_size"
    img_p = jnp.pad(img, ((0, 0), (0, 0), (pad, pad), (pad, pad)))
    crop = img_p[:, :, : stride * (oh - 1) + ksize, : stride * (ow - 1) + ksize]
    patches = crop.reshape(n, c, oh, ksize, ow, ksize)
    patches = jnp.transpose(patches, (3, 5, 0, 1, 2, 4))  # (ky, kx, n, c, oh, ow)
    return patches.reshape(ksize * ksize, n * c * oh * ow)


def _choose_tiling(m_true):
    """Pick (tile_r, num_tiles) for the (n_taps, R, 128) layout."""
    r_needed = max(_GROUP, _round_up(_ceil_div(m_true, _LANES), _GROUP))
    num_tiles = _ceil_div(r_needed, _MAX_TILE_R)
    # v7x megacore + pipelining want >= 2 grid steps; only split when the extra
    # padding that introduces is small (<= 1 group over >= 4 groups of data).
    if num_tiles == 1 and r_needed >= 4 * _GROUP:
        num_tiles = 2
    tile_r = _round_up(_ceil_div(r_needed, num_tiles), _GROUP)
    return tile_r, num_tiles


def _ssim_partial_sums(p1, p2, w_taps, tile_r, m_true):
    """p1/p2: (n_taps, R, 128) with R % tile_r == 0, tile_r % 16 == 0.

    Returns (R // tile_r, 8, 128) per-tile lane-parallel partial sums of the
    masked SSIM map (mask = global element index < m_true).
    """
    n_taps, r_total, lanes = p1.shape
    assert lanes == _LANES and r_total % tile_r == 0 and tile_r % _GROUP == 0
    num_tiles = r_total // tile_r
    groups = tile_r // _GROUP
    tile_elems = tile_r * _LANES
    last_base = (num_tiles - 1) * tile_elems  # element offset of the last tile

    def kernel(p1_ref, p2_ref, out_ref):
        acc = jnp.zeros((_SUBLANES, _LANES), jnp.float32)
        base = pl.program_id(0) * tile_elems

        for g in range(groups):
            r0 = g * _GROUP
            mu1 = mu2 = s11 = s22 = s12 = None
            # 16-tap Gaussian moments, strip-mined to (16,128) f32 vregs so the
            # live set stays ~16 vregs regardless of tile_r (no spilling).
            for k in range(n_taps):
                a = p1_ref[k, r0:r0 + _GROUP, :].astype(jnp.float32)
                b = p2_ref[k, r0:r0 + _GROUP, :].astype(jnp.float32)
                wk = w_taps[k]
                aw = wk * a      # reused below: 10 VALU ops/tap instead of 13
                bw = wk * b
                if k == 0:
                    mu1, mu2 = aw, bw
                    s11, s22, s12 = aw * a, bw * b, aw * b
                else:
                    mu1 = mu1 + aw
                    mu2 = mu2 + bw
                    s11 = s11 + aw * a
                    s22 = s22 + bw * b
                    s12 = s12 + aw * b

            mu1_sq = mu1 * mu1
            mu2_sq = mu2 * mu2
            mu1_mu2 = mu1 * mu2
            sigma1_sq = s11 - mu1_sq
            sigma2_sq = s22 - mu2_sq
            sigma12 = s12 - mu1_mu2
            numer = (2.0 * mu1_mu2 + _C1) * (2.0 * sigma12 + _C2)
            denom = (mu1_sq + mu2_sq + _C1) * (sigma1_sq + sigma2_sq + _C2)
            # EUP slot (otherwise idle); ~1e-3 relative error, fine for a loss.
            ssim = numer * pl.reciprocal(denom, approx=True)

            # Padding exists only in the LAST tile.  Statically decide whether
            # this row-group position can overlap it; bulk groups skip all mask
            # work.  For earlier tiles `gidx < m_true` holds automatically, so
            # the mask is harmlessly all-true there (no tile-index branch).
            g_start_in_last = last_base + r0 * _LANES
            g_end_in_last = g_start_in_last + _GROUP * _LANES
            if g_end_in_last > m_true:
                row = jax.lax.broadcasted_iota(jnp.int32, (_GROUP, _LANES), 0)
                col = jax.lax.broadcasted_iota(jnp.int32, (_GROUP, _LANES), 1)
                gidx = base + r0 * _LANES + row * _LANES + col
                ssim = jnp.where(gidx < m_true, ssim, 0.0)

            # (16,128) -> (8,128) with whole-vreg VPU adds, fold into the carry.
            acc = acc + ssim[:_SUBLANES, :] + ssim[_SUBLANES:, :]

        out_ref[0] = acc

    return pl.pallas_call(
        kernel,
        out_shape=jax.ShapeDtypeStruct((num_tiles, _SUBLANES, _LANES), jnp.float32),
        grid=(num_tiles,),
        in_specs=[
            pl.BlockSpec((n_taps, tile_r, _LANES), lambda i: (0, i, 0)),
            pl.BlockSpec((n_taps, tile_r, _LANES), lambda i: (0, i, 0)),
        ],
        out_specs=pl.BlockSpec((1, _SUBLANES, _LANES), lambda i: (i, 0, 0)),
        compiler_params=pltpu.CompilerParams(
            # Shards tiles across both TensorCores on v7x; harmless elsewhere.
            dimension_semantics=("parallel",),
            # Let XLA fuse the im2col pad/reshape/transpose into the input DMA.
            allow_input_fusion=[True, True],
            # Max footprint: 2 inputs * 2 buffers * 16*256*128*2B = 4 MiB, well
            # under every generation's scoped-VMEM default — no override needed.
        ),
    )(p1, p2)


class S3IMPallas:
    """JAX/Pallas port of nerfstudio's S3IM loss (forward only)."""

    def __init__(self, s3im_kernel_size=4, s3im_stride=4, s3im_repeat_time=10,
                 s3im_patch_height=64, size_average=True, input_dtype=jnp.bfloat16):
        assert s3im_kernel_size == s3im_stride, (
            "this port implements the non-overlapping (kernel == stride) case "
            "used by nerfstudio's defaults")
        self.kernel_size = s3im_kernel_size
        self.stride = s3im_stride
        self.repeat_time = s3im_repeat_time
        self.patch_height = s3im_patch_height
        self.size_average = size_average
        # bf16 input feed halves HBM bytes (v5e ~2x); accumulation stays f32.
        self.input_dtype = input_dtype
        # Gaussian taps baked in as compile-time constants (no VMEM weight operand).
        self.w_taps = _gaussian_taps(s3im_kernel_size, 1.5)
        # Jit the whole forward so the im2col producers can fuse into the call.
        self._forward_jit = jax.jit(self._forward)

    def _build_patches(self, src_vec, tar_vec, key):
        n = tar_vec.shape[0]
        total = self.repeat_time * n
        assert total % self.patch_height == 0, (
            "repeat_time * num_rays must be divisible by patch_height")
        # i == 0 -> identity; i > 0 -> random permutations (jax.random.permutation
        # replaces torch.randperm: same semantics, different RNG stream).
        keys = jax.random.split(key, self.repeat_time)
        index_list = [jnp.arange(n, dtype=jnp.int32)]
        for i in range(1, self.repeat_time):
            index_list.append(jax.random.permutation(keys[i], n).astype(jnp.int32))
        res_index = jnp.concatenate(index_list)

        tar_all = tar_vec[res_index].astype(self.input_dtype)
        src_all = src_vec[res_index].astype(self.input_dtype)
        tar_patch = tar_all.T.reshape(1, 3, self.patch_height, -1)  # NCHW
        src_patch = src_all.T.reshape(1, 3, self.patch_height, -1)  # NCHW

        pad = (self.kernel_size - 1) // 2
        p1 = _im2col_taps_first(src_patch, self.kernel_size, self.stride, pad)
        p2 = _im2col_taps_first(tar_patch, self.kernel_size, self.stride, pad)
        return p1, p2

    def _ssim_mean(self, p1, p2):
        n_taps, m_true = p1.shape
        tile_r, num_tiles = _choose_tiling(m_true)
        m_pad = num_tiles * tile_r * _LANES
        p1 = jnp.pad(p1, ((0, 0), (0, m_pad - m_true))).reshape(n_taps, -1, _LANES)
        p2 = jnp.pad(p2, ((0, 0), (0, m_pad - m_true))).reshape(n_taps, -1, _LANES)
        partials = _ssim_partial_sums(p1, p2, self.w_taps, tile_r, m_true)
        # Divide by the TRUE element count (padding was masked in-kernel).
        return jnp.sum(partials) / jnp.float32(m_true)

    def _forward(self, src_vec, tar_vec, key):
        p1, p2 = self._build_patches(src_vec, tar_vec, key)
        ssim = self._ssim_mean(p1, p2)
        loss = 1.0 - ssim
        if not self.size_average:
            # Batch dim is always 1 in the S3IM forward path, so the per-batch
            # mean equals the global mean.
            loss = jnp.reshape(loss, (1,))
        return loss

    def __call__(self, src_vec, tar_vec, key):
        return self._forward_jit(src_vec, tar_vec, key)


def _reference_loss(p1, p2, w_taps):
    """Plain-JAX reference on the same im2col patches (for a sanity check)."""
    p1 = p1.astype(jnp.float32)
    p2 = p2.astype(jnp.float32)
    w = jnp.asarray(w_taps, dtype=jnp.float32)[:, None]
    mu1 = jnp.sum(w * p1, axis=0)
    mu2 = jnp.sum(w * p2, axis=0)
    mu1_sq, mu2_sq, mu1_mu2 = mu1 * mu1, mu2 * mu2, mu1 * mu2
    s1 = jnp.sum(w * p1 * p1, axis=0) - mu1_sq
    s2 = jnp.sum(w * p2 * p2, axis=0) - mu2_sq
    s12 = jnp.sum(w * p1 * p2, axis=0) - mu1_mu2
    ssim = ((2.0 * mu1_mu2 + _C1) * (2.0 * s12 + _C2)) / (
        (mu1_sq + mu2_sq + _C1) * (s1 + s2 + _C2))
    return 1.0 - jnp.mean(ssim)


if __name__ == "__main__":
    key = jax.random.PRNGKey(0)
    k_src, k_tar, k_perm = jax.random.split(key, 3)

    s3im = S3IMPallas(s3im_kernel_size=4, s3im_stride=4, s3im_repeat_time=10,
                      s3im_patch_height=64, size_average=True)

    # Case 1: nerfstudio-default sizes — 128 rays (RGB) -> patch image (1,3,64,20),
    # M = 240 -> single grid step.
    num_rays = 128
    src_vec = jax.random.uniform(k_src, (num_rays, 3), dtype=jnp.float32)
    tar_vec = jax.random.uniform(k_tar, (num_rays, 3), dtype=jnp.float32)
    loss = jax.block_until_ready(s3im(src_vec, tar_vec, k_perm))
    assert loss.shape == () and bool(jnp.isfinite(loss))
    p1, p2 = s3im._build_patches(src_vec, tar_vec, k_perm)
    ref = jax.block_until_ready(_reference_loss(p1, p2, s3im.w_taps))
    assert abs(float(loss) - float(ref)) < 1e-2, (float(loss), float(ref))

    # Case 2: larger ray batch -> 2-tile grid, strip-mined groups, and the
    # padded-tail mask path (straddling + fully-padded groups) all exercised.
    k_src2, k_tar2, k_perm2 = jax.random.split(jax.random.PRNGKey(1), 3)
    num_rays2 = 4480
    src2 = jax.random.uniform(k_src2, (num_rays2, 3), dtype=jnp.float32)
    tar2 = jax.random.uniform(k_tar2, (num_rays2, 3), dtype=jnp.float32)
    loss2 = jax.block_until_ready(s3im(src2, tar2, k_perm2))
    assert loss2.shape == () and bool(jnp.isfinite(loss2))
    p1b, p2b = s3im._build_patches(src2, tar2, k_perm2)
    ref2 = jax.block_until_ready(_reference_loss(p1b, p2b, s3im.w_taps))
    assert abs(float(loss2) - float(ref2)) < 1e-2, (float(loss2), float(ref2))

    print("KERNEL_OK")
</pallas_src>

<mosaic_0001>
module attributes {stable_mosaic.version = 11 : i64} {
  func.func @kernel(%arg0: i32, %arg1: memref<16x16x128xbf16, #tpu.memory_space<vmem>>, %arg2: memref<16x16x128xbf16, #tpu.memory_space<vmem>>, %arg3: memref<1x8x128xf32, #tpu.memory_space<vmem>>) attributes {dimension_semantics = [#tpu.dimension_semantics<parallel>], iteration_bounds = array<i64: 1>, scalar_prefetch = 0 : i64, scratch_operands = 0 : i64, tpu.core_type = #tpu.core_type<tc>, window_params = [{transform_indices = @transform_0, window_bounds = array<i64: 16, 16, 128>}, {transform_indices = @transform_1, window_bounds = array<i64: 16, 16, 128>}, {transform_indices = @transform_2, window_bounds = array<i64: 1, 8, 128>}]} {
    %cst = arith.constant 0.000000e+00 : f32
    %0 = vector.broadcast %cst : f32 to vector<8x128xf32>
    %c2048_i32 = arith.constant 2048 : i32
    %1 = arith.muli %arg0, %c2048_i32 : i32
    %c0 = arith.constant 0 : index
    %c0_0 = arith.constant 0 : index
    %c0_1 = arith.constant 0 : index
    %2 = vector.load %arg1[%c0, %c0_0, %c0_1] : memref<16x16x128xbf16, #tpu.memory_space<vmem>>, vector<1x16x128xbf16>
    %3 = vector.shape_cast %2 : vector<1x16x128xbf16> to vector<16x128xbf16>
    %4 = arith.extf %3 : vector<16x128xbf16> to vector<16x128xf32>
    %c0_2 = arith.constant 0 : index
    %c0_3 = arith.constant 0 : index
    %c0_4 = arith.constant 0 : index
    %5 = vector.load %arg2[%c0_2, %c0_3, %c0_4] : memref<16x16x128xbf16, #tpu.memory_space<vmem>>, vector<1x16x128xbf16>
    %6 = vector.shape_cast %5 : vector<1x16x128xbf16> to vector<16x128xbf16>
    %7 = arith.extf %6 : vector<16x128xbf16> to vector<16x128xf32>
    %cst_5 = arith.constant 0.0186226591 : f32
    %8 = vector.broadcast %cst_5 : f32 to vector<16x128xf32>
    %9 = arith.mulf %8, %4 : vector<16x128xf32>
    %cst_6 = arith.constant 0.0186226591 : f32
    %10 = vector.broadcast %cst_6 : f32 to vector<16x128xf32>
    %11 = arith.mulf %10, %7 : vector<16x128xf32>
    %12 = arith.mulf %9, %4 : vector<16x128xf32>
    %13 = arith.mulf %11, %7 : vector<16x128xf32>
    %14 = arith.mulf %9, %7 : vector<16x128xf32>
    %c1 = arith.constant 1 : index
    %c0_7 = arith.constant 0 : index
    %c0_8 = arith.constant 0 : index
    %15 = vector.load %arg1[%c1, %c0_7, %c0_8] : memref<16x16x128xbf16, #tpu.memory_space<vmem>>, vector<1x16x128xbf16>
    %16 = vector.shape_cast %15 : vector<1x16x128xbf16> to vector<16x128xbf16>
    %17 = arith.extf %16 : vector<16x128xbf16> to vector<16x128xf32>
    %c1_9 = arith.constant 1 : index
    %c0_10 = arith.constant 0 : index
    %c0_11 = arith.constant 0 : index
    %18 = vector.load %arg2[%c1_9, %c0_10, %c0_11] : memref<16x16x128xbf16, #tpu.memory_space<vmem>>, vector<1x16x128xbf16>
    %19 = vector.shape_cast %18 : vector<1x16x128xbf16> to vector<16x128xbf16>
    %20 = arith.extf %19 : vector<16x128xbf16> to vector<16x128xf32>
    %cst_12 = arith.constant 0.0362719856 : f32
    %21 = vector.broadcast %cst_12 : f32 to vector<16x128xf32>
    %22 = arith.mulf %21, %17 : vector<16x128xf32>
    %cst_13 = arith.constant 0.0362719856 : f32
    %23 = vector.broadcast %cst_13 : f32 to vector<16x128xf32>
    %24 = arith.mulf %23, %20 : vector<16x128xf32>
    %25 = arith.addf %9, %22 : vector<16x128xf32>
    %26 = arith.addf %11, %24 : vector<16x128xf32>
    %27 = arith.mulf %22, %17 : vector<16x128xf32>
    %28 = arith.addf %12, %27 : vector<16x128xf32>
    %29 = arith.mulf %24, %20 : vector<16x128xf32>
    %30 = arith.addf %13, %29 : vector<16x128xf32>
    %31 = arith.mulf %22, %20 : vector<16x128xf32>
    %32 = arith.addf %14, %31 : vector<16x128xf32>
    %c2 = arith.constant 2 : index
    %c0_14 = arith.constant 0 : index
    %c0_15 = arith.constant 0 : index
    %33 = vector.load %arg1[%c2, %c0_14, %c0_15] : memref<16x16x128xbf16, #tpu.memory_space<vmem>>, vector<1x16x128xbf16>
    %34 = vector.shape_cast %33 : vector<1x16x128xbf16> to vector<16x128xbf16>
    %35 = arith.extf %34 : vector<16x128xbf16> to vector<16x128xf32>
    %c2_16 = arith.constant 2 : index
    %c0_17 = arith.constant 0 : index
    %c0_18 = arith.constant 0 : index
    %36 = vector.load %arg2[%c2_16, %c0_17, %c0_18] : memref<16x16x128xbf16, #tpu.memory_space<vmem>>, vector<1x16x128xbf16>
    %37 = vector.shape_cast %36 : vector<1x16x128xbf16> to vector<16x128xbf16>
    %38 = arith.extf %37 : vector<16x128xbf16> to vector<16x128xf32>
    %cst_19 = arith.constant 0.0452982299 : f32
    %39 = vector.broadcast %cst_19 : f32 to vector<16x128xf32>
    %40 = arith.mulf %39, %35 : vector<16x128xf32>
    %cst_20 = arith.constant 0.0452982299 : f32
    %41 = vector.broadcast %cst_20 : f32 to vector<16x128xf32>
    %42 = arith.mulf %41, %38 : vector<16x128xf32>
    %43 = arith.addf %25, %40 : vector<16x128xf32>
    %44 = arith.addf %26, %42 : vector<16x128xf32>
    %45 = arith.mulf %40, %35 : vector<16x128xf32>
    %46 = arith.addf %28, %45 : vector<16x128xf32>
    %47 = arith.mulf %42, %38 : vector<16x128xf32>
    %48 = arith.addf %30, %47 : vector<16x128xf32>
    %49 = arith.mulf %40, %38 : vector<16x128xf32>
    %50 = arith.addf %32, %49 : vector<16x128xf32>
    %c3 = arith.constant 3 : index
    %c0_21 = arith.constant 0 : index
    %c0_22 = arith.constant 0 : index
    %51 = vector.load %arg1[%c3, %c0_21, %c0_22] : memref<16x16x128xbf16, #tpu.memory_space<vmem>>, vector<1x16x128xbf16>
    %52 = vector.shape_cast %51 : vector<1x16x128xbf16> to vector<16x128xbf16>
    %53 = arith.extf %52 : vector<16x128xbf16> to vector<16x128xf32>
    %c3_23 = arith.constant 3 : index
    %c0_24 = arith.constant 0 : index
    %c0_25 = arith.constant 0 : index
    %54 = vector.load %arg2[%c3_23, %c0_24, %c0_25] : memref<16x16x128xbf16, #tpu.memory_space<vmem>>, vector<1x16x128xbf16>
    %55 = vector.shape_cast %54 : vector<1x16x128xbf16> to vector<16x128xbf16>
    %56 = arith.extf %55 : vector<16x128xbf16> to vector<16x128xf32>
    %cst_26 = arith.constant 0.0362719856 : f32
    %57 = vector.broadcast %cst_26 : f32 to vector<16x128xf32>
    %58 = arith.mulf %57, %53 : vector<16x128xf32>
    %cst_27 = arith.constant 0.0362719856 : f32
    %59 = vector.broadcast %cst_27 : f32 to vector<16x128xf32>
    %60 = arith.mulf %59, %56 : vector<16x128xf32>
    %61 = arith.addf %43, %58 : vector<16x128xf32>
    %62 = arith.addf %44, %60 : vector<16x128xf32>
    %63 = arith.mulf %58, %53 : vector<16x128xf32>
    %64 = arith.addf %46, %63 : vector<16x128xf32>
    %65 = arith.mulf %60, %56 : vector<16x128xf32>
    %66 = arith.addf %48, %65 : vector<16x128xf32>
    %67 = arith.mulf %58, %56 : vector<16x128xf32>
    %68 = arith.addf %50, %67 : vector<16x128xf32>
    %c4 = arith.constant 4 : index
    %c0_28 = arith.constant 0 : index
    %c0_29 = arith.constant 0 : index
    %69 = vector.load %arg1[%c4, %c0_28, %c0_29] : memref<16x16x128xbf16, #tpu.memory_space<vmem>>, vector<1x16x128xbf16>
    %70 = vector.shape_cast %69 : vector<1x16x128xbf16> to vector<16x128xbf16>
    %71 = arith.extf %70 : vector<16x128xbf16> to vector<16x128xf32>
    %c4_30 = arith.constant 4 : index
    %c0_31 = arith.constant 0 : index
    %c0_32 = arith.constant 0 : index
    %72 = vector.load %arg2[%c4_30, %c0_31, %c0_32] : memref<16x16x128xbf16, #tpu.memory_space<vmem>>, vector<1x16x128xbf16>
    %73 = vector.shape_cast %72 : vector<1x16x128xbf16> to vector<16x128xbf16>
    %74 = arith.extf %73 : vector<16x128xbf16> to vector<16x128xf32>
    %cst_33 = arith.constant 0.0362719856 : f32
    %75 = vector.broadcast %cst_33 : f32 to vector<16x128xf32>
    %76 = arith.mulf %75, %71 : vector<16x128xf32>
    %cst_34 = arith.constant 0.0362719856 : f32
    %77 = vector.broadcast %cst_34 : f32 to vector<16x128xf32>
    %78 = arith.mulf %77, %74 : vector<16x128xf32>
    %79 = arith.addf %61, %76 : vector<16x128xf32>
    %80 = arith.addf %62, %78 : vector<16x128xf32>
    %81 = arith.mulf %76, %71 : vector<16x128xf32>
    %82 = arith.addf %64, %81 : vector<16x128xf32>
    %83 = arith.mulf %78, %74 : vector<16x128xf32>
    %84 = arith.addf %66, %83 : vector<16x128xf32>
    %85 = arith.mulf %76, %74 : vector<16x128xf32>
    %86 = arith.addf %68, %85 : vector<16x128xf32>
    %c5 = arith.constant 5 : index
    %c0_35 = arith.constant 0 : index
    %c0_36 = arith.constant 0 : index
    %87 = vector.load %arg1[%c5, %c0_35, %c0_36] : memref<16x16x128xbf16, #tpu.memory_space<vmem>>, vector<1x16x128xbf16>
    %88 = vector.shape_cast %87 : vector<1x16x128xbf16> to vector<16x128xbf16>
    %89 = arith.extf %88 : vector<16x128xbf16> to vector<16x128xf32>
    %c5_37 = arith.constant 5 : index
    %c0_38 = arith.constant 0 : index
    %c0_39 = arith.constant 0 : index
    %90 = vector.load %arg2[%c5_37, %c0_38, %c0_39] : memref<16x16x128xbf16, #tpu.memory_space<vmem>>, vector<1x16x128xbf16>
    %91 = vector.shape_cast %90 : vector<1x16x128xbf16> to vector<16x128xbf16>
    %92 = arith.extf %91 : vector<16x128xbf16> to vector<16x128xf32>
    %cst_40 = arith.constant 0.0706481859 : f32
    %93 = vector.broadcast %cst_40 : f32 to vector<16x128xf32>
    %94 = arith.mulf %93, %89 : vector<16x128xf32>
    %cst_41 = arith.constant 0.0706481859 : f32
    %95 = vector.broadcast %cst_41 : f32 to vector<16x128xf32>
    %96 = arith.mulf %95, %92 : vector<16x128xf32>
    %97 = arith.addf %79, %94 : vector<16x128xf32>
    %98 = arith.addf %80, %96 : vector<16x128xf32>
    %99 = arith.mulf %94, %89 : vector<16x128xf32>
    %100 = arith.addf %82, %99 : vector<16x128xf32>
    %101 = arith.mulf %96, %92 : vector<16x128xf32>
    %102 = arith.addf %84, %101 : vector<16x128xf32>
    %103 = arith.mulf %94, %92 : vector<16x128xf32>
    %104 = arith.addf %86, %103 : vector<16x128xf32>
    %c6 = arith.constant 6 : index
    %c0_42 = arith.constant 0 : index
    %c0_43 = arith.constant 0 : index
    %105 = vector.load %arg1[%c6, %c0_42, %c0_43] : memref<16x16x128xbf16, #tpu.memory_space<vmem>>, vector<1x16x128xbf16>
    %106 = vector.shape_cast %105 : vector<1x16x128xbf16> to vector<16x128xbf16>
    %107 = arith.extf %106 : vector<16x128xbf16> to vector<16x128xf32>
    %c6_44 = arith.constant 6 : index
    %c0_45 = arith.constant 0 : index
    %c0_46 = arith.constant 0 : index
    %108 = vector.load %arg2[%c6_44, %c0_45, %c0_46] : memref<16x16x128xbf16, #tpu.memory_space<vmem>>, vector<1x16x128xbf16>
    %109 = vector.shape_cast %108 : vector<1x16x128xbf16> to vector<16x128xbf16>
    %110 = arith.extf %109 : vector<16x128xbf16> to vector<16x128xf32>
    %cst_47 = arith.constant 8.822890e-02 : f32
    %111 = vector.broadcast %cst_47 : f32 to vector<16x128xf32>
    %112 = arith.mulf %111, %107 : vector<16x128xf32>
    %cst_48 = arith.constant 8.822890e-02 : f32
    %113 = vector.broadcast %cst_48 : f32 to vector<16x128xf32>
    %114 = arith.mulf %113, %110 : vector<16x128xf32>
    %115 = arith.addf %97, %112 : vector<16x128xf32>
    %116 = arith.addf %98, %114 : vector<16x128xf32>
    %117 = arith.mulf %112, %107 : vector<16x128xf32>
    %118 = arith.addf %100, %117 : vector<16x128xf32>
    %119 = arith.mulf %114, %110 : vector<16x128xf32>
    %120 = arith.addf %102, %119 : vector<16x128xf32>
    %121 = arith.mulf %112, %110 : vector<16x128xf32>
    %122 = arith.addf %104, %121 : vector<16x128xf32>
    %c7 = arith.constant 7 : index
    %c0_49 = arith.constant 0 : index
    %c0_50 = arith.constant 0 : index
    %123 = vector.load %arg1[%c7, %c0_49, %c0_50] : memref<16x16x128xbf16, #tpu.memory_space<vmem>>, vector<1x16x128xbf16>
    %124 = vector.shape_cast %123 : vector<1x16x128xbf16> to vector<16x128xbf16>
    %125 = arith.extf %124 : vector<16x128xbf16> to vector<16x128xf32>
    %c7_51 = arith.constant 7 : index
    %c0_52 = arith.constant 0 : index
    %c0_53 = arith.constant 0 : index
    %126 = vector.load %arg2[%c7_51, %c0_52, %c0_53] : memref<16x16x128xbf16, #tpu.memory_space<vmem>>, vector<1x16x128xbf16>
    %127 = vector.shape_cast %126 : vector<1x16x128xbf16> to vector<16x128xbf16>
    %128 = arith.extf %127 : vector<16x128xbf16> to vector<16x128xf32>
    %cst_54 = arith.constant 0.0706481859 : f32
    %129 = vector.broadcast %cst_54 : f32 to vector<16x128xf32>
    %130 = arith.mulf %129, %125 : vector<16x128xf32>
    %cst_55 = arith.constant 0.0706481859 : f32
    %131 = vector.broadcast %cst_55 : f32 to vector<16x128xf32>
    %132 = arith.mulf %131, %128 : vector<16x128xf32>
    %133 = arith.addf %115, %130 : vector<16x128xf32>
    %134 = arith.addf %116, %132 : vector<16x128xf32>
    %135 = arith.mulf %130, %125 : vector<16x128xf32>
    %136 = arith.addf %118, %135 : vector<16x128xf32>
    %137 = arith.mulf %132, %128 : vector<16x128xf32>
    %138 = arith.addf %120, %137 : vector<16x128xf32>
    %139 = arith.mulf %130, %128 : vector<16x128xf32>
    %140 = arith.addf %122, %139 : vector<16x128xf32>
    %c8 = arith.constant 8 : index
    %c0_56 = arith.constant 0 : index
    %c0_57 = arith.constant 0 : index
    %141 = vector.load %arg1[%c8, %c0_56, %c0_57] : memref<16x16x128xbf16, #tpu.memory_space<vmem>>, vector<1x16x128xbf16>
    %142 = vector.shape_cast %141 : vector<1x16x128xbf16> to vector<16x128xbf16>
    %143 = arith.extf %142 : vector<16x128xbf16> to vector<16x128xf32>
    %c8_58 = arith.constant 8 : index
    %c0_59 = arith.constant 0 : index
    %c0_60 = arith.constant 0 : index
    %144 = vector.load %arg2[%c8_58, %c0_59, %c0_60] : memref<16x16x128xbf16, #tpu.memory_space<vmem>>, vector<1x16x128xbf16>
    %145 = vector.shape_cast %144 : vector<1x16x128xbf16> to vector<16x128xbf16>
    %146 = arith.extf %145 : vector<16x128xbf16> to vector<16x128xf32>
    %cst_61 = arith.constant 0.0452982299 : f32
    %147 = vector.broadcast %cst_61 : f32 to vector<16x128xf32>
    %148 = arith.mulf %147, %143 : vector<16x128xf32>
    %cst_62 = arith.constant 0.0452982299 : f32
    %149 = vector.broadcast %cst_62 : f32 to vector<16x128xf32>
    %150 = arith.mulf %149, %146 : vector<16x128xf32>
    %151 = arith.addf %133, %148 : vector<16x128xf32>
    %152 = arith.addf %134, %150 : vector<16x128xf32>
    %153 = arith.mulf %148, %143 : vector<16x128xf32>
    %154 = arith.addf %136, %153 : vector<16x128xf32>
    %155 = arith.mulf %150, %146 : vector<16x128xf32>
    %156 = arith.addf %138, %155 : vector<16x128xf32>
    %157 = arith.mulf %148, %146 : vector<16x128xf32>
    %158 = arith.addf %140, %157 : vector<16x128xf32>
    %c9 = arith.constant 9 : index
    %c0_63 = arith.constant 0 : index
    %c0_64 = arith.constant 0 : index
    %159 = vector.load %arg1[%c9, %c0_63, %c0_64] : memref<16x16x128xbf16, #tpu.memory_space<vmem>>, vector<1x16x128xbf16>
    %160 = vector.shape_cast %159 : vector<1x16x128xbf16> to vector<16x128xbf16>
    %161 = arith.extf %160 : vector<16x128xbf16> to vector<16x128xf32>
    %c9_65 = arith.constant 9 : index
    %c0_66 = arith.constant 0 : index
    %c0_67 = arith.constant 0 : index
    %162 = vector.load %arg2[%c9_65, %c0_66, %c0_67] : memref<16x16x128xbf16, #tpu.memory_space<vmem>>, vector<1x16x128xbf16>
    %163 = vector.shape_cast %162 : vector<1x16x128xbf16> to vector<16x128xbf16>
    %164 = arith.extf %163 : vector<16x128xbf16> to vector<16x128xf32>
    %cst_68 = arith.constant 8.822890e-02 : f32
    %165 = vector.broadcast %cst_68 : f32 to vector<16x128xf32>
    %166 = arith.mulf %165, %161 : vector<16x128xf32>
    %cst_69 = arith.constant 8.822890e-02 : f32
    %167 = vector.broadcast %cst_69 : f32 to vector<16x128xf32>
    %168 = arith.mulf %167, %164 : vector<16x128xf32>
    %169 = arith.addf %151, %166 : vector<16x128xf32>
    %170 = arith.addf %152, %168 : vector<16x128xf32>
    %171 = arith.mulf %166, %161 : vector<16x128xf32>
    %172 = arith.addf %154, %171 : vector<16x128xf32>
    %173 = arith.mulf %168, %164 : vector<16x128xf32>
    %174 = arith.addf %156, %173 : vector<16x128xf32>
    %175 = arith.mulf %166, %164 : vector<16x128xf32>
    %176 = arith.addf %158, %175 : vector<16x128xf32>
    %c10 = arith.constant 10 : index
    %c0_70 = arith.constant 0 : index
    %c0_71 = arith.constant 0 : index
    %177 = vector.load %arg1[%c10, %c0_70, %c0_71] : memref<16x16x128xbf16, #tpu.memory_space<vmem>>, vector<1x16x128xbf16>
    %178 = vector.shape_cast %177 : vector<1x16x128xbf16> to vector<16x128xbf16>
    %179 = arith.extf %178 : vector<16x128xbf16> to vector<16x128xf32>
    %c10_72 = arith.constant 10 : index
    %c0_73 = arith.constant 0 : index
    %c0_74 = arith.constant 0 : index
    %180 = vector.load %arg2[%c10_72, %c0_73, %c0_74] : memref<16x16x128xbf16, #tpu.memory_space<vmem>>, vector<1x16x128xbf16>
    %181 = vector.shape_cast %180 : vector<1x16x128xbf16> to vector<16x128xbf16>
    %182 = arith.extf %181 : vector<16x128xbf16> to vector<16x128xf32>
    %cst_75 = arith.constant 0.110184565 : f32
    %183 = vector.broadcast %cst_75 : f32 to vector<16x128xf32>
    %184 = arith.mulf %183, %179 : vector<16x128xf32>
    %cst_76 = arith.constant 0.110184565 : f32
    %185 = vector.broadcast %cst_76 : f32 to vector<16x128xf32>
    %186 = arith.mulf %185, %182 : vector<16x128xf32>
    %187 = arith.addf %169, %184 : vector<16x128xf32>
    %188 = arith.addf %170, %186 : vector<16x128xf32>
    %189 = arith.mulf %184, %179 : vector<16x128xf32>
    %190 = arith.addf %172, %189 : vector<16x128xf32>
    %191 = arith.mulf %186, %182 : vector<16x128xf32>
    %192 = arith.addf %174, %191 : vector<16x128xf32>
    %193 = arith.mulf %184, %182 : vector<16x128xf32>
    %194 = arith.addf %176, %193 : vector<16x128xf32>
    %c11 = arith.constant 11 : index
    %c0_77 = arith.constant 0 : index
    %c0_78 = arith.constant 0 : index
    %195 = vector.load %arg1[%c11, %c0_77, %c0_78] : memref<16x16x128xbf16, #tpu.memory_space<vmem>>, vector<1x16x128xbf16>
    %196 = vector.shape_cast %195 : vector<1x16x128xbf16> to vector<16x128xbf16>
    %197 = arith.extf %196 : vector<16x128xbf16> to vector<16x128xf32>
    %c11_79 = arith.constant 11 : index
    %c0_80 = arith.constant 0 : index
    %c0_81 = arith.constant 0 : index
    %198 = vector.load %arg2[%c11_79, %c0_80, %c0_81] : memref<16x16x128xbf16, #tpu.memory_space<vmem>>, vector<1x16x128xbf16>
    %199 = vector.shape_cast %198 : vector<1x16x128xbf16> to vector<16x128xbf16>
    %200 = arith.extf %199 : vector<16x128xbf16> to vector<16x128xf32>
    %cst_82 = arith.constant 8.822890e-02 : f32
    %201 = vector.broadcast %cst_82 : f32 to vector<16x128xf32>
    %202 = arith.mulf %201, %197 : vector<16x128xf32>
    %cst_83 = arith.constant 8.822890e-02 : f32
    %203 = vector.broadcast %cst_83 : f32 to vector<16x128xf32>
    %204 = arith.mulf %203, %200 : vector<16x128xf32>
    %205 = arith.addf %187, %202 : vector<16x128xf32>
    %206 = arith.addf %188, %204 : vector<16x128xf32>
    %207 = arith.mulf %202, %197 : vector<16x128xf32>
    %208 = arith.addf %190, %207 : vector<16x128xf32>
    %209 = arith.mulf %204, %200 : vector<16x128xf32>
    %210 = arith.addf %192, %209 : vector<16x128xf32>
    %211 = arith.mulf %202, %200 : vector<16x128xf32>
    %212 = arith.addf %194, %211 : vector<16x128xf32>
    %c12 = arith.constant 12 : index
    %c0_84 = arith.constant 0 : index
    %c0_85 = arith.constant 0 : index
    %213 = vector.load %arg1[%c12, %c0_84, %c0_85] : memref<16x16x128xbf16, #tpu.memory_space<vmem>>, vector<1x16x128xbf16>
    %214 = vector.shape_cast %213 : vector<1x16x128xbf16> to vector<16x128xbf16>
    %215 = arith.extf %214 : vector<16x128xbf16> to vector<16x128xf32>
    %c12_86 = arith.constant 12 : index
    %c0_87 = arith.constant 0 : index
    %c0_88 = arith.constant 0 : index
    %216 = vector.load %arg2[%c12_86, %c0_87, %c0_88] : memref<16x16x128xbf16, #tpu.memory_space<vmem>>, vector<1x16x128xbf16>
    %217 = vector.shape_cast %216 : vector<1x16x128xbf16> to vector<16x128xbf16>
    %218 = arith.extf %217 : vector<16x128xbf16> to vector<16x128xf32>
    %cst_89 = arith.constant 0.0362719856 : f32
    %219 = vector.broadcast %cst_89 : f32 to vector<16x128xf32>
    %220 = arith.mulf %219, %215 : vector<16x128xf32>
    %cst_90 = arith.constant 0.0362719856 : f32
    %221 = vector.broadcast %cst_90 : f32 to vector<16x128xf32>
    %222 = arith.mulf %221, %218 : vector<16x128xf32>
    %223 = arith.addf %205, %220 : vector<16x128xf32>
    %224 = arith.addf %206, %222 : vector<16x128xf32>
    %225 = arith.mulf %220, %215 : vector<16x128xf32>
    %226 = arith.addf %208, %225 : vector<16x128xf32>
    %227 = arith.mulf %222, %218 : vector<16x128xf32>
    %228 = arith.addf %210, %227 : vector<16x128xf32>
    %229 = arith.mulf %220, %218 : vector<16x128xf32>
    %230 = arith.addf %212, %229 : vector<16x128xf32>
    %c13 = arith.constant 13 : index
    %c0_91 = arith.constant 0 : index
    %c0_92 = arith.constant 0 : index
    %231 = vector.load %arg1[%c13, %c0_91, %c0_92] : memref<16x16x128xbf16, #tpu.memory_space<vmem>>, vector<1x16x128xbf16>
    %232 = vector.shape_cast %231 : vector<1x16x128xbf16> to vector<16x128xbf16>
    %233 = arith.extf %232 : vector<16x128xbf16> to vector<16x128xf32>
    %c13_93 = arith.constant 13 : index
    %c0_94 = arith.constant 0 : index
    %c0_95 = arith.constant 0 : index
    %234 = vector.load %arg2[%c13_93, %c0_94, %c0_95] : memref<16x16x128xbf16, #tpu.memory_space<vmem>>, vector<1x16x128xbf16>
    %235 = vector.shape_cast %234 : vector<1x16x128xbf16> to vector<16x128xbf16>
    %236 = arith.extf %235 : vector<16x128xbf16> to vector<16x128xf32>
    %cst_96 = arith.constant 0.0706481859 : f32
    %237 = vector.broadcast %cst_96 : f32 to vector<16x128xf32>
    %238 = arith.mulf %237, %233 : vector<16x128xf32>
    %cst_97 = arith.constant 0.0706481859 : f32
    %239 = vector.broadcast %cst_97 : f32 to vector<16x128xf32>
    %240 = arith.mulf %239, %236 : vector<16x128xf32>
    %241 = arith.addf %223, %238 : vector<16x128xf32>
    %242 = arith.addf %224, %240 : vector<16x128xf32>
    %243 = arith.mulf %238, %233 : vector<16x128xf32>
    %244 = arith.addf %226, %243 : vector<16x128xf32>
    %245 = arith.mulf %240, %236 : vector<16x128xf32>
    %246 = arith.addf %228, %245 : vector<16x128xf32>
    %247 = arith.mulf %238, %236 : vector<16x128xf32>
    %248 = arith.addf %230, %247 : vector<16x128xf32>
    %c14 = arith.constant 14 : index
    %c0_98 = arith.constant 0 : index
    %c0_99 = arith.constant 0 : index
    %249 = vector.load %arg1[%c14, %c0_98, %c0_99] : memref<16x16x128xbf16, #tpu.memory_space<vmem>>, vector<1x16x128xbf16>
    %250 = vector.shape_cast %249 : vector<1x16x128xbf16> to vector<16x128xbf16>
    %251 = arith.extf %250 : vector<16x128xbf16> to vector<16x128xf32>
    %c14_100 = arith.constant 14 : index
    %c0_101 = arith.constant 0 : index
    %c0_102 = arith.constant 0 : index
    %252 = vector.load %arg2[%c14_100, %c0_101, %c0_102] : memref<16x16x128xbf16, #tpu.memory_space<vmem>>, vector<1x16x128xbf16>
    %253 = vector.shape_cast %252 : vector<1x16x128xbf16> to vector<16x128xbf16>
    %254 = arith.extf %253 : vector<16x128xbf16> to vector<16x128xf32>
    %cst_103 = arith.constant 8.822890e-02 : f32
    %255 = vector.broadcast %cst_103 : f32 to vector<16x128xf32>
    %256 = arith.mulf %255, %251 : vector<16x128xf32>
    %cst_104 = arith.constant 8.822890e-02 : f32
    %257 = vector.broadcast %cst_104 : f32 to vector<16x128xf32>
    %258 = arith.mulf %257, %254 : vector<16x128xf32>
    %259 = arith.addf %241, %256 : vector<16x128xf32>
    %260 = arith.addf %242, %258 : vector<16x128xf32>
    %261 = arith.mulf %256, %251 : vector<16x128xf32>
    %262 = arith.addf %244, %261 : vector<16x128xf32>
    %263 = arith.mulf %258, %254 : vector<16x128xf32>
    %264 = arith.addf %246, %263 : vector<16x128xf32>
    %265 = arith.mulf %256, %254 : vector<16x128xf32>
    %266 = arith.addf %248, %265 : vector<16x128xf32>
    %c15 = arith.constant 15 : index
    %c0_105 = arith.constant 0 : index
    %c0_106 = arith.constant 0 : index
    %267 = vector.load %arg1[%c15, %c0_105, %c0_106] : memref<16x16x128xbf16, #tpu.memory_space<vmem>>, vector<1x16x128xbf16>
    %268 = vector.shape_cast %267 : vector<1x16x128xbf16> to vector<16x128xbf16>
    %269 = arith.extf %268 : vector<16x128xbf16> to vector<16x128xf32>
    %c15_107 = arith.constant 15 : index
    %c0_108 = arith.constant 0 : index
    %c0_109 = arith.constant 0 : index
    %270 = vector.load %arg2[%c15_107, %c0_108, %c0_109] : memref<16x16x128xbf16, #tpu.memory_space<vmem>>, vector<1x16x128xbf16>
    %271 = vector.shape_cast %270 : vector<1x16x128xbf16> to vector<16x128xbf16>
    %272 = arith.extf %271 : vector<16x128xbf16> to vector<16x128xf32>
    %cst_110 = arith.constant 0.0706481859 : f32
    %273 = vector.broadcast %cst_110 : f32 to vector<16x128xf32>
    %274 = arith.mulf %273, %269 : vector<16x128xf32>
    %cst_111 = arith.constant 0.0706481859 : f32
    %275 = vector.broadcast %cst_111 : f32 to vector<16x128xf32>
    %276 = arith.mulf %275, %272 : vector<16x128xf32>
    %277 = arith.addf %259, %274 : vector<16x128xf32>
    %278 = arith.addf %260, %276 : vector<16x128xf32>
    %279 = arith.mulf %274, %269 : vector<16x128xf32>
    %280 = arith.addf %262, %279 : vector<16x128xf32>
    %281 = arith.mulf %276, %272 : vector<16x128xf32>
    %282 = arith.addf %264, %281 : vector<16x128xf32>
    %283 = arith.mulf %274, %272 : vector<16x128xf32>
    %284 = arith.addf %266, %283 : vector<16x128xf32>
    %285 = arith.mulf %277, %277 : vector<16x128xf32>
    %286 = arith.mulf %278, %278 : vector<16x128xf32>
    %287 = arith.mulf %277, %278 : vector<16x128xf32>
    %288 = arith.subf %280, %285 : vector<16x128xf32>
    %289 = arith.subf %282, %286 : vector<16x128xf32>
    %290 = arith.subf %284, %287 : vector<16x128xf32>
    %cst_112 = arith.constant 2.000000e+00 : f32
    %291 = vector.broadcast %cst_112 : f32 to vector<16x128xf32>
    %292 = arith.mulf %291, %287 : vector<16x128xf32>
    %cst_113 = arith.constant 9.99999974E-5 : f32
    %293 = vector.broadcast %cst_113 : f32 to vector<16x128xf32>
    %294 = arith.addf %292, %293 : vector<16x128xf32>
    %cst_114 = arith.constant 2.000000e+00 : f32
    %295 = vector.broadcast %cst_114 : f32 to vector<16x128xf32>
    %296 = arith.mulf %295, %290 : vector<16x128xf32>
    %cst_115 = arith.constant 8.99999984E-4 : f32
    %297 = vector.broadcast %cst_115 : f32 to vector<16x128xf32>
    %298 = arith.addf %296, %297 : vector<16x128xf32>
    %299 = arith.mulf %294, %298 : vector<16x128xf32>
    %300 = arith.addf %285, %286 : vector<16x128xf32>
    %cst_116 = arith.constant 9.99999974E-5 : f32
    %301 = vector.broadcast %cst_116 : f32 to vector<16x128xf32>
    %302 = arith.addf %300, %301 : vector<16x128xf32>
    %303 = arith.addf %288, %289 : vector<16x128xf32>
    %cst_117 = arith.constant 8.99999984E-4 : f32
    %304 = vector.broadcast %cst_117 : f32 to vector<16x128xf32>
    %305 = arith.addf %303, %304 : vector<16x128xf32>
    %306 = arith.mulf %302, %305 : vector<16x128xf32>
    %307 = tpu.reciprocal %306 {approx = true} : vector<16x128xf32> -> vector<16x128xf32>
    %308 = arith.mulf %299, %307 : vector<16x128xf32>
    %309 = tpu.iota {dimensions = array<i32: 0>} : vector<16x128xi32>
    %310 = tpu.iota {dimensions = array<i32: 1>} : vector<16x128xi32>
    %c0_i32 = arith.constant 0 : i32
    %311 = arith.addi %1, %c0_i32 : i32
    %c128_i32 = arith.constant 128 : i32
    %312 = vector.broadcast %c128_i32 : i32 to vector<16x128xi32>
    %313 = arith.muli %309, %312 : vector<16x128xi32>
    %314 = vector.broadcast %311 : i32 to vector<16x128xi32>
    %315 = arith.addi %314, %313 : vector<16x128xi32>
    %316 = arith.addi %315, %310 : vector<16x128xi32>
    %c240_i32 = arith.constant 240 : i32
    %317 = vector.broadcast %c240_i32 : i32 to vector<16x128xi32>
    %318 = arith.cmpi slt, %316, %317 : vector<16x128xi32>
    %cst_118 = arith.constant 0.000000e+00 : f32
    %319 = vector.broadcast %cst_118 : f32 to vector<16x128xf32>
    %320 = arith.select %318, %308, %319 : vector<16x128xi1>, vector<16x128xf32>
    %321 = vector.extract_strided_slice %320 {offsets = [0, 0], sizes = [8, 128], strides = [1, 1]} : vector<16x128xf32> to vector<8x128xf32>
    %322 = arith.addf %0, %321 : vector<8x128xf32>
    %323 = vector.extract_strided_slice %320 {offsets = [8, 0], sizes = [8, 128], strides = [1, 1]} : vector<16x128xf32> to vector<8x128xf32>
    %324 = arith.addf %322, %323 : vector<8x128xf32>
    %c0_119 = arith.constant 0 : index
    %c0_120 = arith.constant 0 : index
    %c0_121 = arith.constant 0 : index
    %325 = vector.load %arg3[%c0_119, %c0_120, %c0_121] : memref<1x8x128xf32, #tpu.memory_space<vmem>>, vector<1x8x128xf32>
    %326 = vector.shape_cast %325 : vector<1x8x128xf32> to vector<8x128xf32>
    %327 = vector.shape_cast %324 : vector<8x128xf32> to vector<1x8x128xf32>
    tpu.vector_store %arg3[%c0_119, %c0_120, %c0_121], %327 {strides = array<i32>} : memref<1x8x128xf32, #tpu.memory_space<vmem>>, vector<1x8x128xf32>,
    return
  }
  func.func @transform_0(%arg0: i32) -> (i32, i32, i32) {
    %c0_i32 = arith.constant 0 : i32
    %c0_i32_0 = arith.constant 0 : i32
    %c0_i32_1 = arith.constant 0 : i32
    return %c0_i32, %arg0, %c0_i32_0 : i32, i32, i32
  }
  func.func @transform_1(%arg0: i32) -> (i32, i32, i32) {
    %c0_i32 = arith.constant 0 : i32
    %c0_i32_0 = arith.constant 0 : i32
    %c0_i32_1 = arith.constant 0 : i32
    return %c0_i32, %arg0, %c0_i32_0 : i32, i32, i32
  }
  func.func @transform_2(%arg0: i32) -> (i32, i32, i32) {
    %c0_i32 = arith.constant 0 : i32
    %c0_i32_0 = arith.constant 0 : i32
    %c0_i32_1 = arith.constant 0 : i32
    return %arg0, %c0_i32, %c0_i32_0 : i32, i32, i32
  }
}

</mosaic_0001>

<bundles_post_ra>
// kernel: _forward.1
= control target key start
LH: loop header
LB: loop body
LE: loop exit
PB: predicated region body
PF: predicated region fallthrough
CT: control target
= control target key end

     0   :  { %v516_v19 = vlaneseq  ;;  %s877_s0 = inlined_call_operand.vmem [shape: bf16[16,16,128], index: 0, kind: input, shape index: {}]   ;;  %s878_s1 = inlined_call_operand.vmem [shape: bf16[16,16,128], index: 1, kind: input, shape index: {}]   ;;  %s879_s2 = inlined_call_operand.vmem [shape: f32[1,8,128], index: 2, kind: output, shape index: {}]  }
   0x1   :  { %v600_v0 = vld [vmem:[%s877_s0] sm:$0xff]   ;;  %v727_v2 = vld [vmem:[%s877_s0 + $0x8] sm:$0xff]   ;;  %v729_v12 = vld [vmem:[%s877_s0 + $0x10] sm:$0xff]  }
   0x2   :  { %v604_v1 = vld [vmem:[%s878_s1] sm:$0xff]   ;;  %v601_v3 = vunpack.c.l.bf16 %v600_v0  ;;  %v602_v4 = vunpack.c.h.bf16 %v600_v0  ;;  %v728_v7 = vld [vmem:[%s878_s1 + $0x8] sm:$0xff]   ;;  %v609_v8 = vunpack.c.l.bf16 %v727_v2  ;;  %v610_v9 = vunpack.c.h.bf16 %v727_v2  ;;  %v730_v32 = vld [vmem:[%s878_s1 + $0x10] sm:$0xff]  }
   0x3   :  { %v605_v5 = vunpack.c.l.bf16 %v604_v1  ;;  %v606_v6 = vunpack.c.h.bf16 %v604_v1  ;;  %v613_v10 = vunpack.c.l.bf16 %v728_v7  ;;  %v614_v11 = vunpack.c.h.bf16 %v728_v7  ;;  %v731_v45 = vld [vmem:[%s877_s0 + $0x18] sm:$0xff]   ;;  %v733_v7 = vld [vmem:[%s877_s0 + $0x20] sm:$0xff]  }
   0x4   :  { %v20_v13 = vmul.f32 0.01862266, %v601_v3  ;;  %v21_v14 = vmul.f32 0.01862266, %v602_v4  ;;  %v40_v17 = vmul.f32 0.036271986, %v609_v8  ;;  %v617_v22 = vunpack.c.l.bf16 %v729_v12 }
   0x5   :  { %v22_v15 = vmul.f32 0.01862266, %v605_v5  ;;  %v23_v16 = vmul.f32 0.01862266, %v606_v6  ;;  %v41_v18 = vmul.f32 0.036271986, %v610_v9  ;;  %v618_v23 = vunpack.c.h.bf16 %v729_v12 }
   0x6   :  { %v24_v20 = vmul.f32 %v601_v3, %v20_v13  ;;  %v25_v21 = vmul.f32 %v602_v4, %v21_v14  ;;  %v28_v25 = vmul.f32 %v605_v5, %v20_v13  ;;  %v42_v26 = vmul.f32 0.036271986, %v613_v10  ;;  %v732_v58 = vld [vmem:[%s878_s1 + $0x18] sm:$0xff]  }
   0x7   :  { %v26_v24 = vmul.f32 %v605_v5, %v22_v15  ;;  %v43_v27 = vmul.f32 0.036271986, %v614_v11  ;;  %v27_v28 = vmul.f32 %v606_v6, %v23_v16  ;;  %v29_v29 = vmul.f32 %v606_v6, %v21_v14 }
   0x8   :  { %v48_v30 = vmul.f32 %v609_v8, %v40_v17  ;;  %v49_v31 = vmul.f32 %v610_v9, %v41_v18  ;;  %v44_v33 = vadd.f32 %v40_v17, %v20_v13  ;;  %v45_v34 = vadd.f32 %v41_v18, %v21_v14 }
   0x9   :  { %v52_v35 = vmul.f32 %v613_v10, %v42_v26  ;;  %v53_v36 = vmul.f32 %v614_v11, %v43_v27  ;;  %v46_v37 = vadd.f32 %v42_v26, %v22_v15  ;;  %v47_v38 = vadd.f32 %v43_v27, %v23_v16 }
   0xa   :  { %v56_v39 = vmul.f32 %v613_v10, %v40_v17  ;;  %v57_v40 = vmul.f32 %v614_v11, %v41_v18  ;;  %v50_v41 = vadd.f32 %v48_v30, %v24_v20  ;;  %v51_v42 = vadd.f32 %v49_v31, %v25_v21  ;;  %v734_v21 = vld [vmem:[%s878_s1 + $0x20] sm:$0xff]  }
   0xb   :  { %v621_v43 = vunpack.c.l.bf16 %v730_v32  ;;  %v622_v44 = vunpack.c.h.bf16 %v730_v32  ;;  %v54_v46 = vadd.f32 %v52_v35, %v26_v24  ;;  %v55_v47 = vadd.f32 %v53_v36, %v27_v28 }
   0xc   :  { %v70_v48 = vmul.f32 0.04529823, %v617_v22  ;;  %v71_v49 = vmul.f32 0.04529823, %v618_v23  ;;  %v58_v50 = vadd.f32 %v56_v39, %v28_v25  ;;  %v59_v51 = vadd.f32 %v57_v40, %v29_v29 }
   0xd   :  { %v72_v52 = vmul.f32 0.04529823, %v621_v43  ;;  %v73_v53 = vmul.f32 0.04529823, %v622_v44  ;;  %v625_v56 = vunpack.c.l.bf16 %v731_v45  ;;  %v626_v57 = vunpack.c.h.bf16 %v731_v45 }
   0xe   :  { %v78_v54 = vmul.f32 %v617_v22, %v70_v48  ;;  %v79_v55 = vmul.f32 %v618_v23, %v71_v49  ;;  %v74_v59 = vadd.f32 %v70_v48, %v44_v33  ;;  %v75_v60 = vadd.f32 %v71_v49, %v45_v34  ;;  %v735_v34 = vld [vmem:[%s877_s0 + $0x28] sm:$0xff]  }
   0xf   :  { %v82_v61 = vmul.f32 %v621_v43, %v72_v52  ;;  %v83_v62 = vmul.f32 %v622_v44, %v73_v53  ;;  %v76_v63 = vadd.f32 %v72_v52, %v46_v37  ;;  %v77_v0 = vadd.f32 %v73_v53, %v47_v38 }
  0x10   :  { %v86_v1 = vmul.f32 %v621_v43, %v70_v48  ;;  %v87_v2 = vmul.f32 %v622_v44, %v71_v49  ;;  %v80_v3 = vadd.f32 %v78_v54, %v50_v41  ;;  %v81_v4 = vadd.f32 %v79_v55, %v51_v42 }
  0x11   :  { %v629_v5 = vunpack.c.l.bf16 %v732_v58  ;;  %v630_v6 = vunpack.c.h.bf16 %v732_v58  ;;  %v84_v8 = vadd.f32 %v82_v61, %v54_v46  ;;  %v85_v9 = vadd.f32 %v83_v62, %v55_v47  ;;  %v736_v47 = vld [vmem:[%s878_s1 + $0x28] sm:$0xff]  }
  0x12   :  { %v100_v10 = vmul.f32 0.036271986, %v625_v56  ;;  %v101_v11 = vmul.f32 0.036271986, %v626_v57  ;;  %v88_v12 = vadd.f32 %v86_v1, %v58_v50  ;;  %v89_v13 = vadd.f32 %v87_v2, %v59_v51 }
  0x13   :  { %v102_v14 = vmul.f32 0.036271986, %v629_v5  ;;  %v103_v15 = vmul.f32 0.036271986, %v630_v6  ;;  %v633_v18 = vunpack.c.l.bf16 %v733_v7  ;;  %v634_v20 = vunpack.c.h.bf16 %v733_v7 }
  0x14   :  { %v108_v16 = vmul.f32 %v625_v56, %v100_v10  ;;  %v109_v17 = vmul.f32 %v626_v57, %v101_v11  ;;  %v104_v22 = vadd.f32 %v100_v10, %v74_v59  ;;  %v105_v23 = vadd.f32 %v101_v11, %v75_v60  ;;  %v737_v60 = vld [vmem:[%s877_s0 + $0x30] sm:$0xff]  }
  0x15   :  { %v112_v24 = vmul.f32 %v629_v5, %v102_v14  ;;  %v113_v25 = vmul.f32 %v630_v6, %v103_v15  ;;  %v106_v26 = vadd.f32 %v102_v14, %v76_v63  ;;  %v107_v27 = vadd.f32 %v103_v15, %v77_v0 }
  0x16   :  { %v116_v28 = vmul.f32 %v629_v5, %v100_v10  ;;  %v117_v29 = vmul.f32 %v630_v6, %v101_v11  ;;  %v110_v30 = vadd.f32 %v108_v16, %v80_v3  ;;  %v111_v31 = vadd.f32 %v109_v17, %v81_v4 }
  0x17   :  { %v637_v32 = vunpack.c.l.bf16 %v734_v21  ;;  %v638_v33 = vunpack.c.h.bf16 %v734_v21  ;;  %v114_v35 = vadd.f32 %v112_v24, %v84_v8  ;;  %v115_v36 = vadd.f32 %v113_v25, %v85_v9  ;;  %v738_v9 = vld [vmem:[%s878_s1 + $0x30] sm:$0xff]  }
  0x18   :  { %v130_v37 = vmul.f32 0.036271986, %v633_v18  ;;  %v131_v38 = vmul.f32 0.036271986, %v634_v20  ;;  %v118_v39 = vadd.f32 %v116_v28, %v88_v12  ;;  %v119_v40 = vadd.f32 %v117_v29, %v89_v13 }
  0x19   :  { %v132_v41 = vmul.f32 0.036271986, %v637_v32  ;;  %v133_v42 = vmul.f32 0.036271986, %v638_v33  ;;  %v641_v45 = vunpack.c.l.bf16 %v735_v34  ;;  %v642_v46 = vunpack.c.h.bf16 %v735_v34 }
  0x1a   :  { %v138_v43 = vmul.f32 %v633_v18, %v130_v37  ;;  %v139_v44 = vmul.f32 %v634_v20, %v131_v38  ;;  %v134_v48 = vadd.f32 %v130_v37, %v104_v22  ;;  %v135_v49 = vadd.f32 %v131_v38, %v105_v23  ;;  %v739_v23 = vld [vmem:[%s877_s0 + $0x38] sm:$0xff]  }
  0x1b   :  { %v142_v50 = vmul.f32 %v637_v32, %v132_v41  ;;  %v143_v51 = vmul.f32 %v638_v33, %v133_v42  ;;  %v136_v52 = vadd.f32 %v132_v41, %v106_v26  ;;  %v137_v53 = vadd.f32 %v133_v42, %v107_v27 }
  0x1c   :  { %v146_v54 = vmul.f32 %v637_v32, %v130_v37  ;;  %v147_v55 = vmul.f32 %v638_v33, %v131_v38  ;;  %v140_v56 = vadd.f32 %v138_v43, %v110_v30  ;;  %v141_v57 = vadd.f32 %v139_v44, %v111_v31 }
  0x1d   :  { %v645_v58 = vunpack.c.l.bf16 %v736_v47  ;;  %v646_v59 = vunpack.c.h.bf16 %v736_v47  ;;  %v144_v61 = vadd.f32 %v142_v50, %v114_v35  ;;  %v145_v62 = vadd.f32 %v143_v51, %v115_v36  ;;  %v740_v36 = vld [vmem:[%s878_s1 + $0x38] sm:$0xff]  }
  0x1e   :  { %v160_v63 = vmul.f32 0.070648186, %v641_v45  ;;  %v161_v0 = vmul.f32 0.070648186, %v642_v46  ;;  %v148_v1 = vadd.f32 %v146_v54, %v118_v39  ;;  %v149_v2 = vadd.f32 %v147_v55, %v119_v40 }
  0x1f   :  { %v162_v3 = vmul.f32 0.070648186, %v645_v58  ;;  %v163_v4 = vmul.f32 0.070648186, %v646_v59  ;;  %v649_v7 = vunpack.c.l.bf16 %v737_v60  ;;  %v650_v8 = vunpack.c.h.bf16 %v737_v60 }
  0x20   :  { %v168_v5 = vmul.f32 %v641_v45, %v160_v63  ;;  %v169_v6 = vmul.f32 %v642_v46, %v161_v0  ;;  %v164_v10 = vadd.f32 %v160_v63, %v134_v48  ;;  %v165_v11 = vadd.f32 %v161_v0, %v135_v49  ;;  %v741_v49 = vld [vmem:[%s877_s0 + $0x40] sm:$0xff]  }
  0x21   :  { %v172_v12 = vmul.f32 %v645_v58, %v162_v3  ;;  %v173_v13 = vmul.f32 %v646_v59, %v163_v4  ;;  %v166_v14 = vadd.f32 %v162_v3, %v136_v52  ;;  %v167_v15 = vadd.f32 %v163_v4, %v137_v53 }
  0x22   :  { %v176_v16 = vmul.f32 %v645_v58, %v160_v63  ;;  %v177_v17 = vmul.f32 %v646_v59, %v161_v0  ;;  %v170_v18 = vadd.f32 %v168_v5, %v140_v56  ;;  %v171_v20 = vadd.f32 %v169_v6, %v141_v57 }
  0x23   :  { %v653_v21 = vunpack.c.l.bf16 %v738_v9  ;;  %v654_v22 = vunpack.c.h.bf16 %v738_v9  ;;  %v174_v24 = vadd.f32 %v172_v12, %v144_v61  ;;  %v175_v25 = vadd.f32 %v173_v13, %v145_v62  ;;  %v742_v62 = vld [vmem:[%s878_s1 + $0x40] sm:$0xff]  }
  0x24   :  { %v190_v26 = vmul.f32 0.0882289, %v649_v7  ;;  %v191_v27 = vmul.f32 0.0882289, %v650_v8  ;;  %v178_v28 = vadd.f32 %v176_v16, %v148_v1  ;;  %v179_v29 = vadd.f32 %v177_v17, %v149_v2 }
  0x25   :  { %v192_v30 = vmul.f32 0.0882289, %v653_v21  ;;  %v193_v31 = vmul.f32 0.0882289, %v654_v22  ;;  %v657_v34 = vunpack.c.l.bf16 %v739_v23  ;;  %v658_v35 = vunpack.c.h.bf16 %v739_v23 }
  0x26   :  { %v198_v32 = vmul.f32 %v649_v7, %v190_v26  ;;  %v199_v33 = vmul.f32 %v650_v8, %v191_v27  ;;  %v194_v37 = vadd.f32 %v190_v26, %v164_v10  ;;  %v195_v38 = vadd.f32 %v191_v27, %v165_v11  ;;  %v743_v11 = vld [vmem:[%s877_s0 + $0x48] sm:$0xff]  }
  0x27   :  { %v202_v39 = vmul.f32 %v653_v21, %v192_v30  ;;  %v203_v40 = vmul.f32 %v654_v22, %v193_v31  ;;  %v196_v41 = vadd.f32 %v192_v30, %v166_v14  ;;  %v197_v42 = vadd.f32 %v193_v31, %v167_v15 }
  0x28   :  { %v206_v43 = vmul.f32 %v653_v21, %v190_v26  ;;  %v207_v44 = vmul.f32 %v654_v22, %v191_v27  ;;  %v200_v45 = vadd.f32 %v198_v32, %v170_v18  ;;  %v201_v46 = vadd.f32 %v199_v33, %v171_v20 }
  0x29   :  { %v661_v47 = vunpack.c.l.bf16 %v740_v36  ;;  %v662_v48 = vunpack.c.h.bf16 %v740_v36  ;;  %v204_v50 = vadd.f32 %v202_v39, %v174_v24  ;;  %v205_v51 = vadd.f32 %v203_v40, %v175_v25  ;;  %v744_v25 = vld [vmem:[%s878_s1 + $0x48] sm:$0xff]  }
  0x2a   :  { %v220_v52 = vmul.f32 0.070648186, %v657_v34  ;;  %v221_v53 = vmul.f32 0.070648186, %v658_v35  ;;  %v208_v54 = vadd.f32 %v206_v43, %v178_v28  ;;  %v209_v55 = vadd.f32 %v207_v44, %v179_v29 }
  0x2b   :  { %v222_v56 = vmul.f32 0.070648186, %v661_v47  ;;  %v223_v57 = vmul.f32 0.070648186, %v662_v48  ;;  %v665_v60 = vunpack.c.l.bf16 %v741_v49  ;;  %v666_v61 = vunpack.c.h.bf16 %v741_v49 }
  0x2c   :  { %v228_v58 = vmul.f32 %v657_v34, %v220_v52  ;;  %v229_v59 = vmul.f32 %v658_v35, %v221_v53  ;;  %v224_v63 = vadd.f32 %v220_v52, %v194_v37  ;;  %v225_v0 = vadd.f32 %v221_v53, %v195_v38  ;;  %v745_v38 = vld [vmem:[%s877_s0 + $0x50] sm:$0xff]  }
  0x2d   :  { %v232_v1 = vmul.f32 %v661_v47, %v222_v56  ;;  %v233_v2 = vmul.f32 %v662_v48, %v223_v57  ;;  %v226_v3 = vadd.f32 %v222_v56, %v196_v41  ;;  %v227_v4 = vadd.f32 %v223_v57, %v197_v42 }
  0x2e   :  { %v236_v5 = vmul.f32 %v661_v47, %v220_v52  ;;  %v237_v6 = vmul.f32 %v662_v48, %v221_v53  ;;  %v230_v7 = vadd.f32 %v228_v58, %v200_v45  ;;  %v231_v8 = vadd.f32 %v229_v59, %v201_v46 }
  0x2f   :  { %v669_v9 = vunpack.c.l.bf16 %v742_v62  ;;  %v670_v10 = vunpack.c.h.bf16 %v742_v62  ;;  %v234_v12 = vadd.f32 %v232_v1, %v204_v50  ;;  %v235_v13 = vadd.f32 %v233_v2, %v205_v51  ;;  %v746_v51 = vld [vmem:[%s878_s1 + $0x50] sm:$0xff]  }
  0x30   :  { %v250_v14 = vmul.f32 0.04529823, %v665_v60  ;;  %v251_v15 = vmul.f32 0.04529823, %v666_v61  ;;  %v238_v16 = vadd.f32 %v236_v5, %v208_v54  ;;  %v239_v17 = vadd.f32 %v237_v6, %v209_v55 }
  0x31   :  { %v252_v18 = vmul.f32 0.04529823, %v669_v9  ;;  %v253_v20 = vmul.f32 0.04529823, %v670_v10  ;;  %v673_v23 = vunpack.c.l.bf16 %v743_v11  ;;  %v674_v24 = vunpack.c.h.bf16 %v743_v11 }
  0x32   :  { %v258_v21 = vmul.f32 %v665_v60, %v250_v14  ;;  %v259_v22 = vmul.f32 %v666_v61, %v251_v15  ;;  %v254_v26 = vadd.f32 %v250_v14, %v224_v63  ;;  %v255_v27 = vadd.f32 %v251_v15, %v225_v0  ;;  %v747_v0 = vld [vmem:[%s877_s0 + $0x58] sm:$0xff]  }
  0x33   :  { %v262_v28 = vmul.f32 %v669_v9, %v252_v18  ;;  %v263_v29 = vmul.f32 %v670_v10, %v253_v20  ;;  %v256_v30 = vadd.f32 %v252_v18, %v226_v3  ;;  %v257_v31 = vadd.f32 %v253_v20, %v227_v4 }
  0x34   :  { %v266_v32 = vmul.f32 %v669_v9, %v250_v14  ;;  %v267_v33 = vmul.f32 %v670_v10, %v251_v15  ;;  %v260_v34 = vadd.f32 %v258_v21, %v230_v7  ;;  %v261_v35 = vadd.f32 %v259_v22, %v231_v8 }
  0x35   :  { %v677_v36 = vunpack.c.l.bf16 %v744_v25  ;;  %v678_v37 = vunpack.c.h.bf16 %v744_v25  ;;  %v264_v39 = vadd.f32 %v262_v28, %v234_v12  ;;  %v265_v40 = vadd.f32 %v263_v29, %v235_v13  ;;  %v748_v13 = vld [vmem:[%s878_s1 + $0x58] sm:$0xff]  }
  0x36   :  { %v280_v41 = vmul.f32 0.0882289, %v673_v23  ;;  %v281_v42 = vmul.f32 0.0882289, %v674_v24  ;;  %v268_v43 = vadd.f32 %v266_v32, %v238_v16  ;;  %v269_v44 = vadd.f32 %v267_v33, %v239_v17 }
  0x37   :  { %v282_v45 = vmul.f32 0.0882289, %v677_v36  ;;  %v283_v46 = vmul.f32 0.0882289, %v678_v37  ;;  %v681_v49 = vunpack.c.l.bf16 %v745_v38  ;;  %v682_v50 = vunpack.c.h.bf16 %v745_v38 }
  0x38   :  { %v288_v47 = vmul.f32 %v673_v23, %v280_v41  ;;  %v289_v48 = vmul.f32 %v674_v24, %v281_v42  ;;  %v284_v52 = vadd.f32 %v280_v41, %v254_v26  ;;  %v285_v53 = vadd.f32 %v281_v42, %v255_v27  ;;  %v749_v27 = vld [vmem:[%s877_s0 + $0x60] sm:$0xff]  }
  0x39   :  { %v292_v54 = vmul.f32 %v677_v36, %v282_v45  ;;  %v293_v55 = vmul.f32 %v678_v37, %v283_v46  ;;  %v286_v56 = vadd.f32 %v282_v45, %v256_v30  ;;  %v287_v57 = vadd.f32 %v283_v46, %v257_v31 }
  0x3a   :  { %v296_v58 = vmul.f32 %v677_v36, %v280_v41  ;;  %v297_v59 = vmul.f32 %v678_v37, %v281_v42  ;;  %v290_v60 = vadd.f32 %v288_v47, %v260_v34  ;;  %v291_v61 = vadd.f32 %v289_v48, %v261_v35 }
  0x3b   :  { %v685_v62 = vunpack.c.l.bf16 %v746_v51  ;;  %v686_v63 = vunpack.c.h.bf16 %v746_v51  ;;  %v294_v1 = vadd.f32 %v292_v54, %v264_v39  ;;  %v295_v2 = vadd.f32 %v293_v55, %v265_v40  ;;  %v750_v40 = vld [vmem:[%s878_s1 + $0x60] sm:$0xff]  }
  0x3c   :  { %v310_v3 = vmul.f32 0.110184565, %v681_v49  ;;  %v311_v4 = vmul.f32 0.110184565, %v682_v50  ;;  %v298_v5 = vadd.f32 %v296_v58, %v268_v43  ;;  %v299_v6 = vadd.f32 %v297_v59, %v269_v44 }
  0x3d   :  { %v312_v7 = vmul.f32 0.110184565, %v685_v62  ;;  %v313_v8 = vmul.f32 0.110184565, %v686_v63  ;;  %v689_v11 = vunpack.c.l.bf16 %v747_v0  ;;  %v690_v12 = vunpack.c.h.bf16 %v747_v0 }
  0x3e   :  { %v318_v9 = vmul.f32 %v681_v49, %v310_v3  ;;  %v319_v10 = vmul.f32 %v682_v50, %v311_v4  ;;  %v314_v14 = vadd.f32 %v310_v3, %v284_v52  ;;  %v315_v15 = vadd.f32 %v311_v4, %v285_v53  ;;  %v751_v53 = vld [vmem:[%s877_s0 + $0x68] sm:$0xff]  }
  0x3f   :  { %v322_v16 = vmul.f32 %v685_v62, %v312_v7  ;;  %v323_v17 = vmul.f32 %v686_v63, %v313_v8  ;;  %v316_v18 = vadd.f32 %v312_v7, %v286_v56  ;;  %v317_v20 = vadd.f32 %v313_v8, %v287_v57 }
  0x40   :  { %v326_v21 = vmul.f32 %v685_v62, %v310_v3  ;;  %v327_v22 = vmul.f32 %v686_v63, %v311_v4  ;;  %v320_v23 = vadd.f32 %v318_v9, %v290_v60  ;;  %v321_v24 = vadd.f32 %v319_v10, %v291_v61 }
  0x41   :  { %v693_v25 = vunpack.c.l.bf16 %v748_v13  ;;  %v694_v26 = vunpack.c.h.bf16 %v748_v13  ;;  %v324_v28 = vadd.f32 %v322_v16, %v294_v1  ;;  %v325_v29 = vadd.f32 %v323_v17, %v295_v2  ;;  %v752_v2 = vld [vmem:[%s878_s1 + $0x68] sm:$0xff]  }
  0x42   :  { %v340_v30 = vmul.f32 0.0882289, %v689_v11  ;;  %v341_v31 = vmul.f32 0.0882289, %v690_v12  ;;  %v328_v32 = vadd.f32 %v326_v21, %v298_v5  ;;  %v329_v33 = vadd.f32 %v327_v22, %v299_v6 }
  0x43   :  { %v342_v34 = vmul.f32 0.0882289, %v693_v25  ;;  %v343_v35 = vmul.f32 0.0882289, %v694_v26  ;;  %v697_v38 = vunpack.c.l.bf16 %v749_v27  ;;  %v698_v39 = vunpack.c.h.bf16 %v749_v27 }
  0x44   :  { %v348_v36 = vmul.f32 %v689_v11, %v340_v30  ;;  %v349_v37 = vmul.f32 %v690_v12, %v341_v31  ;;  %v344_v41 = vadd.f32 %v340_v30, %v314_v14  ;;  %v345_v42 = vadd.f32 %v341_v31, %v315_v15  ;;  %v753_v15 = vld [vmem:[%s877_s0 + $0x70] sm:$0xff]  }
  0x45   :  { %v352_v43 = vmul.f32 %v693_v25, %v342_v34  ;;  %v353_v44 = vmul.f32 %v694_v26, %v343_v35  ;;  %v346_v45 = vadd.f32 %v342_v34, %v316_v18  ;;  %v347_v46 = vadd.f32 %v343_v35, %v317_v20 }
  0x46   :  { %v356_v47 = vmul.f32 %v693_v25, %v340_v30  ;;  %v357_v48 = vmul.f32 %v694_v26, %v341_v31  ;;  %v350_v49 = vadd.f32 %v348_v36, %v320_v23  ;;  %v351_v50 = vadd.f32 %v349_v37, %v321_v24 }
  0x47   :  { %v701_v51 = vunpack.c.l.bf16 %v750_v40  ;;  %v702_v52 = vunpack.c.h.bf16 %v750_v40  ;;  %v354_v54 = vadd.f32 %v352_v43, %v324_v28  ;;  %v355_v55 = vadd.f32 %v353_v44, %v325_v29  ;;  %v754_v29 = vld [vmem:[%s878_s1 + $0x70] sm:$0xff]  }
  0x48   :  { %v370_v56 = vmul.f32 0.036271986, %v697_v38  ;;  %v371_v57 = vmul.f32 0.036271986, %v698_v39  ;;  %v358_v58 = vadd.f32 %v356_v47, %v328_v32  ;;  %v359_v59 = vadd.f32 %v357_v48, %v329_v33 }
  0x49   :  { %v372_v60 = vmul.f32 0.036271986, %v701_v51  ;;  %v373_v61 = vmul.f32 0.036271986, %v702_v52  ;;  %v705_v0 = vunpack.c.l.bf16 %v751_v53  ;;  %v706_v1 = vunpack.c.h.bf16 %v751_v53 }
  0x4a   :  { %v378_v62 = vmul.f32 %v697_v38, %v370_v56  ;;  %v379_v63 = vmul.f32 %v698_v39, %v371_v57  ;;  %v374_v3 = vadd.f32 %v370_v56, %v344_v41  ;;  %v375_v4 = vadd.f32 %v371_v57, %v345_v42  ;;  %v755_v42 = vld [vmem:[%s877_s0 + $0x78] sm:$0xff]  }
  0x4b   :  { %v382_v5 = vmul.f32 %v701_v51, %v372_v60  ;;  %v383_v6 = vmul.f32 %v702_v52, %v373_v61  ;;  %v376_v7 = vadd.f32 %v372_v60, %v346_v45  ;;  %v377_v8 = vadd.f32 %v373_v61, %v347_v46 }
  0x4c   :  { %v386_v9 = vmul.f32 %v701_v51, %v370_v56  ;;  %v387_v10 = vmul.f32 %v702_v52, %v371_v57  ;;  %v380_v11 = vadd.f32 %v378_v62, %v350_v49  ;;  %v381_v12 = vadd.f32 %v379_v63, %v351_v50 }
  0x4d   :  { %v709_v13 = vunpack.c.l.bf16 %v752_v2  ;;  %v710_v14 = vunpack.c.h.bf16 %v752_v2  ;;  %v384_v16 = vadd.f32 %v382_v5, %v354_v54  ;;  %v385_v17 = vadd.f32 %v383_v6, %v355_v55  ;;  %v756_v55 = vld [vmem:[%s878_s1 + $0x78] sm:$0xff]  }
  0x4e   :  { %v400_v18 = vmul.f32 0.070648186, %v705_v0  ;;  %v401_v20 = vmul.f32 0.070648186, %v706_v1  ;;  %v388_v21 = vadd.f32 %v386_v9, %v358_v58  ;;  %v389_v22 = vadd.f32 %v387_v10, %v359_v59 }
  0x4f   :  { %v402_v23 = vmul.f32 0.070648186, %v709_v13  ;;  %v403_v24 = vmul.f32 0.070648186, %v710_v14  ;;  %v713_v27 = vunpack.c.l.bf16 %v753_v15  ;;  %v714_v28 = vunpack.c.h.bf16 %v753_v15 }
  0x50   :  { %v408_v25 = vmul.f32 %v705_v0, %v400_v18  ;;  %v409_v26 = vmul.f32 %v706_v1, %v401_v20  ;;  %v404_v30 = vadd.f32 %v400_v18, %v374_v3  ;;  %v405_v31 = vadd.f32 %v401_v20, %v375_v4 }
  0x51   :  { %v412_v32 = vmul.f32 %v709_v13, %v402_v23  ;;  %v413_v33 = vmul.f32 %v710_v14, %v403_v24  ;;  %v406_v34 = vadd.f32 %v402_v23, %v376_v7  ;;  %v407_v35 = vadd.f32 %v403_v24, %v377_v8 }
  0x52   :  { %v416_v36 = vmul.f32 %v709_v13, %v400_v18  ;;  %v417_v37 = vmul.f32 %v710_v14, %v401_v20  ;;  %v410_v38 = vadd.f32 %v408_v25, %v380_v11  ;;  %v411_v39 = vadd.f32 %v409_v26, %v381_v12 }
  0x53   :  { %v717_v40 = vunpack.c.l.bf16 %v754_v29  ;;  %v718_v41 = vunpack.c.h.bf16 %v754_v29  ;;  %v414_v43 = vadd.f32 %v412_v32, %v384_v16  ;;  %v415_v44 = vadd.f32 %v413_v33, %v385_v17 }
  0x54   :  { %v430_v45 = vmul.f32 0.0882289, %v713_v27  ;;  %v431_v46 = vmul.f32 0.0882289, %v714_v28  ;;  %v418_v47 = vadd.f32 %v416_v36, %v388_v21  ;;  %v419_v48 = vadd.f32 %v417_v37, %v389_v22 }
  0x55   :  { %v432_v49 = vmul.f32 0.0882289, %v717_v40  ;;  %v433_v50 = vmul.f32 0.0882289, %v718_v41  ;;  %v721_v53 = vunpack.c.l.bf16 %v755_v42  ;;  %v722_v54 = vunpack.c.h.bf16 %v755_v42 }
  0x56   :  { %v438_v51 = vmul.f32 %v713_v27, %v430_v45  ;;  %v439_v52 = vmul.f32 %v714_v28, %v431_v46  ;;  %v434_v56 = vadd.f32 %v430_v45, %v404_v30  ;;  %v435_v57 = vadd.f32 %v431_v46, %v405_v31 }
  0x57   :  { %v442_v58 = vmul.f32 %v717_v40, %v432_v49  ;;  %v443_v59 = vmul.f32 %v718_v41, %v433_v50  ;;  %v436_v60 = vadd.f32 %v432_v49, %v406_v34  ;;  %v437_v61 = vadd.f32 %v433_v50, %v407_v35 }
  0x58   :  { %v446_v62 = vmul.f32 %v717_v40, %v430_v45  ;;  %v447_v63 = vmul.f32 %v718_v41, %v431_v46  ;;  %v440_v0 = vadd.f32 %v438_v51, %v410_v38  ;;  %v441_v1 = vadd.f32 %v439_v52, %v411_v39 }
  0x59   :  { %v725_v2 = vunpack.c.l.bf16 %v756_v55  ;;  %v726_v3 = vunpack.c.h.bf16 %v756_v55  ;;  %v444_v4 = vadd.f32 %v442_v58, %v414_v43  ;;  %v445_v5 = vadd.f32 %v443_v59, %v415_v44 }
  0x5a   :  { %v460_v6 = vmul.f32 0.070648186, %v721_v53  ;;  %v461_v7 = vmul.f32 0.070648186, %v722_v54  ;;  %v448_v8 = vadd.f32 %v446_v62, %v418_v47  ;;  %v449_v9 = vadd.f32 %v447_v63, %v419_v48 }
  0x5b   :  { %v462_v10 = vmul.f32 0.070648186, %v725_v2  ;;  %v463_v11 = vmul.f32 0.070648186, %v726_v3  ;;  %v517_v46 = vshrl.u32 %v516_v19, 7 }
  0x5c   :  { %v464_v12 = vadd.f32 %v460_v6, %v434_v56  ;;  %v465_v13 = vadd.f32 %v461_v7, %v435_v57  ;;  %v468_v14 = vmul.f32 %v721_v53, %v460_v6  ;;  %v469_v15 = vmul.f32 %v722_v54, %v461_v7 }
  0x5d   :  { %v466_v16 = vadd.f32 %v462_v10, %v436_v60  ;;  %v467_v17 = vadd.f32 %v463_v11, %v437_v61  ;;  %v472_v18 = vmul.f32 %v725_v2, %v462_v10  ;;  %v473_v20 = vmul.f32 %v726_v3, %v463_v11 }
  0x5e   :  { %v470_v21 = vadd.f32 %v468_v14, %v440_v0  ;;  %v471_v22 = vadd.f32 %v469_v15, %v441_v1  ;;  %v476_v23 = vmul.f32 %v725_v2, %v460_v6  ;;  %v477_v24 = vmul.f32 %v726_v3, %v461_v7 }
  0x5f   :  { %v474_v25 = vadd.f32 %v472_v18, %v444_v4  ;;  %v475_v26 = vadd.f32 %v473_v20, %v445_v5  ;;  %v480_v27 = vmul.f32 %v464_v12, %v464_v12  ;;  %v481_v28 = vmul.f32 %v465_v13, %v465_v13 }
  0x60   :  { %v478_v29 = vadd.f32 %v476_v23, %v448_v8  ;;  %v479_v30 = vadd.f32 %v477_v24, %v449_v9  ;;  %v482_v31 = vmul.f32 %v466_v16, %v466_v16  ;;  %v483_v32 = vmul.f32 %v467_v17, %v467_v17 }
  0x61   :  { %v484_v33 = vmul.f32 %v466_v16, %v464_v12  ;;  %v485_v34 = vmul.f32 %v467_v17, %v465_v13  ;;  %v486_v35 = vsub.f32 %v470_v21, %v480_v27  ;;  %v487_v36 = vsub.f32 %v471_v22, %v481_v28 }
  0x62   :  { %v488_v37 = vsub.f32 %v474_v25, %v482_v31  ;;  %v489_v38 = vsub.f32 %v475_v26, %v483_v32  ;;  %v502_v39 = vadd.f32 %v482_v31, %v480_v27  ;;  %v503_v40 = vadd.f32 %v483_v32, %v481_v28 }
  0x63   :  { %v490_v45 = vsub.f32 %v478_v29, %v484_v33  ;;  %v491_v47 = vsub.f32 %v479_v30, %v485_v34  ;;  %v492_v52 = vmul.f32 2.0, %v484_v33  ;;  %v518_v54 = vadd.s32 8, %v517_v46 }
  0x64   :  { %v504_v41 = vadd.f32 0.0001, %v502_v39  ;;  %v505_v42 = vadd.f32 0.0001, %v503_v40  ;;  %v506_v43 = vadd.f32 %v488_v37, %v486_v35  ;;  %v507_v44 = vadd.f32 %v489_v38, %v487_v36 }
  0x65   :  { %v496_v53 = vmul.f32 2.0, %v490_v45  ;;  %v493_v55 = vmul.f32 2.0, %v485_v34  ;;  %v497_v56 = vmul.f32 2.0, %v491_v47  ;;  %v520_v57 = vand.u32 127, %v516_v19 }
  0x66   :  { %v508_v48 = vadd.f32 0.0009, %v506_v43  ;;  %v509_v49 = vadd.f32 0.0009, %v507_v44  ;;  %v521_v58 = vmul.u32 128, %v517_v46  ;;  %v522_v61 = vmul.u32 128, %v518_v54 }
  0x67   :  { %v494_v59 = vadd.f32 0.0001, %v492_v52  ;;  %v498_v60 = vadd.f32 0.0009, %v496_v53  ;;  %v495_v62 = vadd.f32 0.0001, %v493_v55 }
  0x68   :  { %v510_v50 = vmul.f32 %v508_v48, %v504_v41  ;;  %v511_v51 = vmul.f32 %v509_v49, %v505_v42  ;;  %v499_v63 = vadd.f32 0.0009, %v497_v56  ;;  %v526_v0 = vadd.s32 %v521_v58, %v520_v57 }
  0x69   :  { %v500_v1 = vmul.f32 %v498_v60, %v494_v59  ;;  %v527_v2 = vadd.s32 %v522_v61, %v520_v57 }
  0x6a   :  { %757 = vrcp.f32 %v510_v50  ;;  %v501_v3 = vmul.f32 %v499_v63, %v495_v62  ;;  %vm528_vm0 = vcmp.lt.s32.totalorder %v526_v0, 240 }
  0x6b   :  { %759 = vrcp.f32 %v511_v51  ;;  %vm529_vm1 = vcmp.lt.s32.totalorder %v527_v2, 240 }
  0x74   :  { %v758_v4 = vpop.eup %757 }
  0x75   :  { %v760_v5 = vpop.eup %759  ;;  %v514_v6 = vmul.f32 %v758_v4, %v500_v1 }
  0x76   :  { %v515_v7 = vmul.f32 %v760_v5, %v501_v3 }
  0x77   :  { %v530_v8 = vsel %vm528_vm0, %v514_v6, 0.0 }
  0x78   :  { %v531_v9 = vsel %vm529_vm1, %v515_v7, 0.0 }
  0x79   :  { %v533_v10 = vadd.f32 %v531_v9, %v530_v8 }
  0x7b   :  { %534 = vst [vmem:[%s879_s2] sm:$0xff] %v533_v10 }

</bundles_post_ra>
